<compile_context>
chip_gen: v7x
topology: tpu7x:2x2x1
jax: 0.10.0
libtpu: 0.0.40
codegen_flags: <defaults>
</compile_context>

<pallas_src>
import functools

import jax
import jax.numpy as jnp
import numpy as np
from jax.experimental import pallas as pl
from jax.experimental.pallas import tpu as pltpu

_LANE = 128      # lane width (time axis padding)
_BLOCK_ROWS = 8  # sublane-aligned batch block per grid step


@functools.lru_cache(maxsize=None)
def _gamma_power_matrix(gamma: float, tp: int):
    """M[j, i] = gamma**(j - i) for j >= i else 0, shape (tp, tp), f32.

    Built once per (gamma, tp) on the host (numpy) and cached, so XLA sees a
    literal constant and no per-call construction ops or extra work happen.
    """
    j = np.arange(tp, dtype=np.int64)[:, None]
    i = np.arange(tp, dtype=np.int64)[None, :]
    diff = j - i
    m = np.where(diff >= 0, np.float64(gamma) ** diff, 0.0).astype(np.float32)
    return jnp.asarray(m)


def _critic_loss_kernel(r_ref, v_ref, m_ref, loss_ref, *, seq_len):
    r = r_ref[...]            # (BB, TP) f32, zero-padded past seq_len / batch
    v = v_ref[...]            # (BB, TP) f32, zero-padded past seq_len / batch
    m = m_ref[...]            # (TP, TP) f32, gamma-power matrix

    # Reverse discounted-reward scan as one MXU matmul:
    #   disc[b, i] = sum_{j >= i} r[b, j] * gamma**(j - i)
    # Padded lanes of disc are exactly zero (r padding x M structure).
    disc = jnp.dot(r, m, preferred_element_type=jnp.float32)   # (BB, TP)

    bb, tp = disc.shape
    lane = jax.lax.broadcasted_iota(jnp.int32, (bb, tp), 1)
    mask = lane < seq_len
    n = jnp.float32(seq_len)

    # Per-row normalization (torch .std() is unbiased, ddof = 1).
    mean = jnp.sum(disc, axis=1, keepdims=True) / n             # (BB, 1)
    centered = jnp.where(mask, disc - mean, 0.0)                # only mask needed
    var = jnp.sum(centered * centered, axis=1, keepdims=True) / (n - 1.0)
    out = centered * jax.lax.rsqrt(var)                         # (BB, TP)

    # v is zero-padded and out is zero in padded lanes -> adv already zero there.
    adv = out - v
    loss_ref[...] = jnp.sum(adv * adv, axis=1, keepdims=True) / n   # (BB, 1)


def critic_loss_batched(rewards, values, gamma=0.99, *, block_rows=_BLOCK_ROWS):
    """rewards, values: f32[B, T]  ->  f32[B] per-sequence critic losses.

    Note: T == 1 yields nan (ddof=1 std), matching torch.
    """
    rewards = jnp.asarray(rewards, jnp.float32)
    values = jnp.asarray(values, jnp.float32)
    assert rewards.shape == values.shape and rewards.ndim == 2
    b, t = rewards.shape

    tp = _LANE * pl.cdiv(t, _LANE)          # pad time to a lane multiple
    bb = block_rows
    bp = bb * pl.cdiv(b, bb)                # pad batch to a block multiple

    # TODO(synk): for long episodes (tp >~ 2048) the dense O(tp^2) M should be
    # replaced by a K-tiled matvec or a scaled suffix-sum (pltpu.roll) variant
    # to stay inside v7x's 64 MiB VMEM.

    r = jnp.zeros((bp, tp), jnp.float32).at[:b, :t].set(rewards)
    v = jnp.zeros((bp, tp), jnp.float32).at[:b, :t].set(values)
    m = _gamma_power_matrix(float(gamma), tp)

    kernel = functools.partial(_critic_loss_kernel, seq_len=t)
    grid = (bp // bb,)
    flops = 2 * bp * tp * tp + 8 * bp * tp
    bytes_accessed = 4 * (tp * tp + 2 * bp * tp + bp)

    losses = pl.pallas_call(
        kernel,
        out_shape=jax.ShapeDtypeStruct((bp, 1), jnp.float32),
        grid_spec=pltpu.PrefetchScalarGridSpec(
            num_scalar_prefetch=0,
            grid=grid,
            in_specs=[
                pl.BlockSpec((bb, tp), lambda i: (i, 0)),
                pl.BlockSpec((bb, tp), lambda i: (i, 0)),
                pl.BlockSpec((tp, tp), lambda i: (0, 0)),   # resident across grid
            ],
            out_specs=pl.BlockSpec((bb, 1), lambda i: (i, 0)),
        ),
        compiler_params=pltpu.CompilerParams(
            dimension_semantics=("parallel",),
        ),
        cost_estimate=pl.CostEstimate(
            flops=flops, transcendentals=0, bytes_accessed=bytes_accessed),
    )(r, v, m)
    return losses[:b, 0]


def critic_loss(rewards, values, gamma=0.99):
    """CriticLoss.forward: rewards, values f32[T] -> scalar f32 loss."""
    rewards = jnp.asarray(rewards, jnp.float32).reshape(1, -1)
    values = jnp.asarray(values, jnp.float32).reshape(1, -1)
    return critic_loss_batched(rewards, values, gamma)[0]


def _reference_loss(rewards, values, gamma=0.99):
    rewards = np.asarray(rewards, np.float64)
    values = np.asarray(values, np.float64)
    disc = np.zeros_like(rewards)
    val = 0.0
    for k in reversed(range(len(rewards))):
        val = rewards[k] + gamma * val
        disc[k] = val
    out = (disc - disc.mean()) / disc.std(ddof=1)
    adv = out - values
    return np.float32((adv ** 2).mean())


if __name__ == "__main__":
    key = jax.random.PRNGKey(0)
    k1, k2, k3, k4 = jax.random.split(key, 4)

    # Module semantics: single 1-D sequence -> scalar loss.
    T = 8
    rewards = jax.random.normal(k1, (T,), dtype=jnp.float32)
    values = jax.random.normal(k2, (T,), dtype=jnp.float32)
    loss = jax.block_until_ready(critic_loss(rewards, values, gamma=0.99))
    ref = _reference_loss(np.asarray(rewards), np.asarray(values), gamma=0.99)
    np.testing.assert_allclose(np.asarray(loss), ref, rtol=1e-4, atol=1e-5)

    # Batched path (throughput API): (B, T) -> (B,) losses.
    B = 4
    rewards_b = jax.random.normal(k3, (B, T), dtype=jnp.float32)
    values_b = jax.random.normal(k4, (B, T), dtype=jnp.float32)
    losses_b = jax.block_until_ready(
        critic_loss_batched(rewards_b, values_b, gamma=0.99))
    refs_b = np.array([
        _reference_loss(np.asarray(rewards_b[i]), np.asarray(values_b[i]), 0.99)
        for i in range(B)
    ])
    np.testing.assert_allclose(np.asarray(losses_b), refs_b, rtol=1e-4, atol=1e-5)

    print("KERNEL_OK")
</pallas_src>

<mosaic_0001>
module attributes {stable_mosaic.version = 11 : i64} {
  func.func @_critic_loss_kernel(%arg0: i32, %arg1: memref<8x128xf32, #tpu.memory_space<vmem>>, %arg2: memref<8x128xf32, #tpu.memory_space<vmem>>, %arg3: memref<128x128xf32, #tpu.memory_space<vmem>>, %arg4: memref<8x1xf32, #tpu.memory_space<vmem>>) attributes {dimension_semantics = [#tpu.dimension_semantics<parallel>], iteration_bounds = array<i64: 1>, scalar_prefetch = 0 : i64, scratch_operands = 0 : i64, tpu.core_type = #tpu.core_type<tc>, window_params = [{transform_indices = @transform_0, window_bounds = array<i64: 8, 128>}, {transform_indices = @transform_1, window_bounds = array<i64: 8, 128>}, {pipeline_mode = #tpu.pipeline_mode<synchronous>, transform_indices = @transform_2, window_bounds = array<i64: 128, 128>}, {transform_indices = @transform_3, window_bounds = array<i64: 8, 1>}]} {
    %c0 = arith.constant 0 : index
    %c0_0 = arith.constant 0 : index
    %0 = vector.load %arg1[%c0, %c0_0] : memref<8x128xf32, #tpu.memory_space<vmem>>, vector<8x128xf32>
    %c0_1 = arith.constant 0 : index
    %c0_2 = arith.constant 0 : index
    %1 = vector.load %arg2[%c0_1, %c0_2] : memref<8x128xf32, #tpu.memory_space<vmem>>, vector<8x128xf32>
    %c0_3 = arith.constant 0 : index
    %c0_4 = arith.constant 0 : index
    %2 = vector.load %arg3[%c0_3, %c0_4] : memref<128x128xf32, #tpu.memory_space<vmem>>, vector<128x128xf32>
    %cst = arith.constant dense<0.000000e+00> : vector<8x128xf32>
    %3 = tpu.matmul %0, %2, %cst {dimension_numbers = #tpu.dot_dimension_numbers<[1], [0], [0], [1], [0, 0, 1, 1], [], []>} : vector<8x128xf32>, vector<128x128xf32>, vector<8x128xf32> -> vector<8x128xf32>
    %4 = tpu.iota {dimensions = array<i32: 1>} : vector<8x128xi32>
    %c8_i32 = arith.constant 8 : i32
    %5 = vector.broadcast %c8_i32 : i32 to vector<8x128xi32>
    %6 = arith.cmpi slt, %4, %5 : vector<8x128xi32>
    %cst_5 = arith.constant dense<0.000000e+00> : vector<8xf32>
    %7 = vector.multi_reduction <add>, %3, %cst_5 [1] : vector<8x128xf32> to vector<8xf32>
    %8 = vector.shape_cast %7 : vector<8xf32> to vector<8x1xf32>
    %cst_6 = arith.constant 8.000000e+00 : f32
    %9 = vector.broadcast %cst_6 : f32 to vector<8x1xf32>
    %10 = arith.divf %8, %9 : vector<8x1xf32>
    %11 = vector.broadcast %10 : vector<8x1xf32> to vector<8x128xf32>
    %12 = arith.subf %3, %11 : vector<8x128xf32>
    %cst_7 = arith.constant 0.000000e+00 : f32
    %13 = vector.broadcast %cst_7 : f32 to vector<8x128xf32>
    %14 = arith.select %6, %12, %13 : vector<8x128xi1>, vector<8x128xf32>
    %15 = arith.mulf %14, %14 : vector<8x128xf32>
    %cst_8 = arith.constant dense<0.000000e+00> : vector<8xf32>
    %16 = vector.multi_reduction <add>, %15, %cst_8 [1] : vector<8x128xf32> to vector<8xf32>
    %17 = vector.shape_cast %16 : vector<8xf32> to vector<8x1xf32>
    %cst_9 = arith.constant 8.000000e+00 : f32
    %cst_10 = arith.constant 1.000000e+00 : f32
    %18 = arith.subf %cst_9, %cst_10 : f32
    %19 = vector.broadcast %18 : f32 to vector<8x1xf32>
    %20 = arith.divf %17, %19 : vector<8x1xf32>
    %21 = math.rsqrt %20 : vector<8x1xf32>
    %22 = vector.broadcast %21 : vector<8x1xf32> to vector<8x128xf32>
    %23 = arith.mulf %14, %22 : vector<8x128xf32>
    %24 = arith.subf %23, %1 : vector<8x128xf32>
    %25 = arith.mulf %24, %24 : vector<8x128xf32>
    %cst_11 = arith.constant dense<0.000000e+00> : vector<8xf32>
    %26 = vector.multi_reduction <add>, %25, %cst_11 [1] : vector<8x128xf32> to vector<8xf32>
    %27 = vector.shape_cast %26 : vector<8xf32> to vector<8x1xf32>
    %cst_12 = arith.constant 8.000000e+00 : f32
    %28 = vector.broadcast %cst_12 : f32 to vector<8x1xf32>
    %29 = arith.divf %27, %28 : vector<8x1xf32>
    %c0_13 = arith.constant 0 : index
    %c0_14 = arith.constant 0 : index
    %30 = vector.load %arg4[%c0_13, %c0_14] : memref<8x1xf32, #tpu.memory_space<vmem>>, vector<8x1xf32>
    tpu.vector_store %arg4[%c0_13, %c0_14], %29 {strides = array<i32>} : memref<8x1xf32, #tpu.memory_space<vmem>>, vector<8x1xf32>,
    return
  }
  func.func @transform_0(%arg0: i32) -> (i32, i32) {
    %c0_i32 = arith.constant 0 : i32
    %c0_i32_0 = arith.constant 0 : i32
    return %arg0, %c0_i32 : i32, i32
  }
  func.func @transform_1(%arg0: i32) -> (i32, i32) {
    %c0_i32 = arith.constant 0 : i32
    %c0_i32_0 = arith.constant 0 : i32
    return %arg0, %c0_i32 : i32, i32
  }
  func.func @transform_2(%arg0: i32) -> (i32, i32) {
    %c0_i32 = arith.constant 0 : i32
    %c0_i32_0 = arith.constant 0 : i32
    %c0_i32_1 = arith.constant 0 : i32
    return %c0_i32, %c0_i32_0 : i32, i32
  }
  func.func @transform_3(%arg0: i32) -> (i32, i32) {
    %c0_i32 = arith.constant 0 : i32
    %c0_i32_0 = arith.constant 0 : i32
    return %arg0, %c0_i32 : i32, i32
  }
}

</mosaic_0001>

<bundles_post_ra>
// kernel: tpu_custom_call.1
= control target key start
LH: loop header
LB: loop body
LE: loop exit
PB: predicated region body
PF: predicated region fallthrough
CT: control target
= control target key end

     0   :  { %8 = vsyncpa [#allocation3], 0  ;;  %s391_s0 = inlined_call_operand.hbm [shape: f32[8,128], index: 0, kind: input, shape index: {}]   ;;  %s392_s1 = inlined_call_operand.hbm [shape: f32[8,128], index: 1, kind: input, shape index: {}]   ;;  %s393_s2 = inlined_call_operand.hbm [shape: f32[128,128], index: 2, kind: input, shape index: {}]   ;;  %s394_s3 = inlined_call_operand.vmem [shape: f32[8,1], index: 3, kind: output, shape index: {}]  }
   0x1   :  { %9 = vsyncpa [#allocation5], 0  ;;  %s324_s12 = smov [#allocation4]   ;;  %s325_s14 = smov [#allocation2]  }
   0x2   :  { %s26_s13 = sshll.u32 %s324_s12, 4  ;;  %s16_s15 = sshll.u32 %s325_s14, 4  ;;  %s27_s13 = int_to_ptr.vmem [resolvable:$true] %s26_s13  ;;  %s17_s15 = int_to_ptr.vmem [resolvable:$true] %s16_s15 }
   0x3   :  { %s254_s18 = scalar_lea.hbm %s392_s1, 128 }
   0x4   :  { %p255_p0 = scmp.ne.s32.totalorder %s392_s1, %s254_s18  ;;  %p258_p1 = scmp.lt.u32.totalorder %s254_s18, %s392_s1 }
   0x6   :  { %p260_p2 = pnand %p258_p1, %p255_p0 }
   0x8   :  { %263 = shalt.err (!%p260_p2)
}
   0x9   :  { %s264_s23 = scalar_lea.vmem %s27_s13, 128  ;;  %p269_p4 = scmp.lt.s32.totalorder %s27_s13, %s27_s13 }
   0xa   :  { %p265_p3 = scmp.ne.s32.totalorder %s27_s13, %s264_s23  ;;  %p270_p5 = scmp.lt.s32.totalorder %s264_s23, %s264_s23 }
   0xc   :  { %p271_p6 = por %p270_p5, %p269_p4 }
   0xe   :  { %p272_p7 = pnand %p271_p6, %p265_p3 }
  0x10   :  { %275 = shalt.err (!%p272_p7)
}
  0x11   :  { %29 = dma.hbm_to_vmem [thread:$0]  %s392_s1, 128, %s27_s13, [#allocation5]  }
  0x12   :  { %s276_s28 = scalar_lea.hbm %s391_s0, 128 }
  0x13   :  { %p277_p8 = scmp.ne.s32.totalorder %s391_s0, %s276_s28  ;;  %p280_p9 = scmp.lt.u32.totalorder %s276_s28, %s391_s0 }
  0x15   :  { %p282_p10 = pnand %p280_p9, %p277_p8 }
  0x17   :  { %285 = shalt.err (!%p282_p10)
}
  0x18   :  { %s286_s6 = scalar_lea.vmem %s17_s15, 128  ;;  %p291_p12 = scmp.lt.s32.totalorder %s17_s15, %s17_s15 }
  0x19   :  { %p287_p11 = scmp.ne.s32.totalorder %s17_s15, %s286_s6  ;;  %p292_p13 = scmp.lt.s32.totalorder %s286_s6, %s286_s6 }
  0x1b   :  { %p293_p0 = por %p292_p13, %p291_p12 }
  0x1d   :  { %p294_p1 = pnand %p293_p0, %p287_p11 }
  0x1f   :  { %297 = shalt.err (!%p294_p1)
}
  0x20   :  { %19 = dma.hbm_to_vmem [thread:$0]  %s391_s0, 128, %s17_s15, [#allocation3]  }
  0x21   :  { %s326_s8 = smov [#allocation6]   ;;  %s298_s12 = scalar_lea.hbm %s393_s2, 2048 }
  0x22   :  { %s35_s9 = sshll.u32 %s326_s8, 4  ;;  %p299_p2 = scmp.ne.s32.totalorder %s393_s2, %s298_s12  ;;  %s36_s9 = int_to_ptr.vmem [resolvable:$true] %s35_s9 }
  0x23   :  { %p302_p3 = scmp.lt.u32.totalorder %s298_s12, %s393_s2 }
  0x25   :  { %p304_p4 = pnand %p302_p3, %p299_p2 }
  0x27   :  { %307 = shalt.err (!%p304_p4)
}
  0x28   :  { %s308_s18 = scalar_lea.vmem %s36_s9, 2048  ;;  %p313_p6 = scmp.lt.s32.totalorder %s36_s9, %s36_s9 }
  0x29   :  { %p309_p5 = scmp.ne.s32.totalorder %s36_s9, %s308_s18  ;;  %p314_p7 = scmp.lt.s32.totalorder %s308_s18, %s308_s18 }
  0x2b   :  { %p315_p8 = por %p314_p7, %p313_p6 }
  0x2d   :  { %p316_p9 = pnand %p315_p8, %p309_p5 }
  0x2f   :  { %319 = shalt.err (!%p316_p9)
}
  0x30   :  { %s327_s0 = smov 128   ;;  %s328_s15 = smov 8  }
  0x31   :  { %41 = dma.hbm_to_vmem [thread:$0]  %s393_s2, 2048, %s36_s9, [#allocation5], %s327_s0, %s327_s0, %s328_s15  }
  0x32   :  { %320 = dma.done.wait [#allocation3], 128  }
  0x33   :  { %321 = vsyncadd [#allocation3], 4294967168 }
  0x34   :  { %322 = dma.done.wait [#allocation5], 2176  }
  0x35   :  { %323 = vsyncadd [#allocation5], 4294965120  ;;  %v329_v0 = vmov 0.0|0.0   ;;  %vm330_vm0 = vmmov 0   ;;  %v331_v1 = vmov 0.0   ;;  %v53_v2 = vld [vmem:[#allocation6] sm:$0xff]  ;;  %v139_v29 = vlaneseq }
  0x36   :  { %220 = vmatprep.subr.bf16.mxu0 %v329_v0  ;;  %217 = vmatprep.mubr.msk.f32.mxu0 %vm330_vm0, %v331_v1  ;;  %v54_v3 = vld [vmem:[#allocation6 + $0x8] sm:$0xff]  ;;  %v55_v4 = vld [vmem:[#allocation6 + $0x10] sm:$0xff]  ;;  %v56_v6 = vld [vmem:[#allocation6 + $0x18] sm:$0xff]  ;;  %vm160_vm2 = vcmask 7168  }
  0x37   :  { %v221_v5 = vpack.c.bf16 %v54_v3, %v53_v2  ;;  %v224_v7 = vpack.c.bf16 %v56_v6, %v55_v4  ;;  %v57_v8 = vld [vmem:[#allocation6 + $0x20] sm:$0xff]  ;;  %v58_v9 = vld [vmem:[#allocation6 + $0x28] sm:$0xff]  ;;  %v59_v11 = vld [vmem:[#allocation6 + $0x30] sm:$0xff]  ;;  %v140_v30 = vand.u32 127, %v139_v29 }
  0x38   :  { %v227_v10 = vpack.c.bf16 %v58_v9, %v57_v8  ;;  %v60_v12 = vld [vmem:[#allocation6 + $0x38] sm:$0xff]  ;;  %v61_v14 = vld [vmem:[#allocation6 + $0x40] sm:$0xff]  ;;  %v62_v15 = vld [vmem:[#allocation6 + $0x48] sm:$0xff] }
  0x39   :  { %222 = vmatpush3.bf16.msra.mxu0 %v221_v5  ;;  %v230_v13 = vpack.c.bf16 %v60_v12, %v59_v11  ;;  %v233_v16 = vpack.c.bf16 %v62_v15, %v61_v14  ;;  %v63_v17 = vld [vmem:[#allocation6 + $0x50] sm:$0xff]  ;;  %v64_v18 = vld [vmem:[#allocation6 + $0x58] sm:$0xff]  ;;  %v65_v20 = vld [vmem:[#allocation6 + $0x60] sm:$0xff]  ;;  %vm141_vm1 = vcmp.lt.s32.totalorder %v140_v30, 8 }
  0x3a   :  { %223 = vmatprep.subr.bf16.mxu0 %v329_v0  ;;  %v236_v19 = vpack.c.bf16 %v64_v18, %v63_v17  ;;  %v66_v21 = vld [vmem:[#allocation6 + $0x68] sm:$0xff]  ;;  %v67_v23 = vld [vmem:[#allocation6 + $0x70] sm:$0xff]  ;;  %v68_v24 = vld [vmem:[#allocation6 + $0x78] sm:$0xff] }
  0x3b   :  { %v239_v22 = vpack.c.bf16 %v66_v21, %v65_v20  ;;  %v242_v25 = vpack.c.bf16 %v68_v24, %v67_v23  ;;  %v51_v26 = vld [vmem:[#allocation2] sm:$0xff]  ;;  %v52_v39 = vld [vmem:[#allocation4] sm:$0xff] }
  0x3d   :  { %225 = vmatpush3.bf16.msra.mxu0 %v224_v7 }
  0x3e   :  { %226 = vmatprep.subr.bf16.mxu0 %v329_v0 }
  0x41   :  { %228 = vmatpush3.bf16.msra.mxu0 %v227_v10 }
  0x42   :  { %229 = vmatprep.subr.bf16.mxu0 %v329_v0 }
  0x45   :  { %231 = vmatpush3.bf16.msra.mxu0 %v230_v13 }
  0x46   :  { %232 = vmatprep.subr.bf16.mxu0 %v329_v0 }
  0x49   :  { %234 = vmatpush3.bf16.msra.mxu0 %v233_v16 }
  0x4a   :  { %235 = vmatprep.subr.bf16.mxu0 %v329_v0 }
  0x4d   :  { %237 = vmatpush3.bf16.msra.mxu0 %v236_v19 }
  0x4e   :  { %238 = vmatprep.subr.bf16.mxu0 %v329_v0 }
  0x51   :  { %240 = vmatpush3.bf16.msra.mxu0 %v239_v22 }
  0x52   :  { %241 = vmatprep.subr.bf16.mxu0 %v329_v0 }
  0x55   :  { %243 = vmatpush3.bf16.msra.mxu0 %v242_v25 }
  0x58   :  { %218 = vmatmul.mubr.f32.vlgmr.msra.gmra.mrb[0].mxu0 %v51_v26 }
 0x12b   :  { %v135_v27 = vpop.f32.mrb[0].mxu0 }
 0x12c   :  { %142 = vadd.xlane.f32.xlu0 %v135_v27  ;;  %v219_v28 = vpop.f32.mrb[1].mxu0 }
 0x1b9   :  { %v143_v31 = vpop.xlane.xlu0 %142 }
 0x1ba   :  { %v145_v32 = vmul.f32 0.125, %v143_v31 }
 0x1bc   :  { %v146_v33 = vsub.f32 %v135_v27, %v145_v32 }
 0x1be   :  { %v147_v34 = vsel %vm141_vm1, %v146_v33, 0.0 }
 0x1bf   :  { %v148_v35 = vmul.f32 %v147_v34, %v147_v34 }
 0x1c1   :  { %149 = vadd.xlane.f32.xlu0 %v148_v35 }
 0x24e   :  { %v150_v36 = vpop.xlane.xlu0 %149 }
 0x24f   :  { %v152_v37 = vmul.f32 0.14285715, %v150_v36 }
 0x251   :  { %252 = vrsqrt.f32 %v152_v37 }
 0x25b   :  { %v253_v38 = vpop.eup %252 }
 0x25c   :  { %v154_v40 = vmul.f32 %v253_v38, %v147_v34 }
 0x25e   :  { %v155_v41 = vsub.f32 %v154_v40, %v52_v39 }
 0x260   :  { %v156_v42 = vmul.f32 %v155_v41, %v155_v41 }
 0x262   :  { %157 = vadd.xlane.f32.xlu1 %v156_v42 }
 0x2ef   :  { %v158_v43 = vpop.xlane.xlu1 %157 }
 0x2f0   :  { %v159_v44 = vmul.f32 0.125, %v158_v43 }
 0x2f2   :  { %161 = vst.msk [vmem:[%s394_s3] sm:$0xff] %vm160_vm2, %v159_v44 }
 0x2f3   :  { %166 = vsyncpa [#allocation3], 1 }
 0x2f4   :  { %167 = vsyncpa [#allocation5], 1 }

</bundles_post_ra>
